<compile_context>
chip_gen: v7x
topology: tpu7x:2x2x1
jax: 0.10.0
libtpu: 0.0.40
codegen_flags: <defaults>
</compile_context>

<pallas_src>
import jax
import jax.numpy as jnp
from jax.experimental import pallas as pl
from jax.experimental.pallas import tpu as pltpu

# ----------------------------------------------------------------------------
# Problem sizes (synthetic, small — consistent with the nn.Module)
# ----------------------------------------------------------------------------
BATCH = 2
N_SCALAR = 4            # num_scalar_input
H, W = 16, 16           # image_shape
K = 5                   # final_kernel_size
PAD = K // 2
P = H * W               # np.prod(image_shape)
NEG_SLOPE = 0.01        # nn.LeakyReLU() default


# ----------------------------------------------------------------------------
# Fused kernel: Linear (VPU MACs) + LeakyReLU + KxK 'same' cross-correlation,
# both batch images packed along the lane axis.
# ----------------------------------------------------------------------------
def fused_kernel(xs_ref, cw_ref, w_ref, b_ref, o_ref):
    # xs_ref: SMEM (B*N,)              scalar inputs, batch-major
    # cw_ref: SMEM (K*K + 1,)          conv weight (row-major) then conv bias
    # w_ref : VMEM (N, H+2p, B*(W+2p)) zero-bordered, lane-packed linear weight
    # b_ref : VMEM (H+2p, B*(W+2p))    zero-bordered, lane-packed linear bias
    # o_ref : VMEM (B, H, W)
    n_sz, hp, wpt = w_ref.shape            # static shapes, not module globals
    b_sz, h, w_sz = o_ref.shape
    w_per = wpt // b_sz                    # W + 2*pad: per-image lane stride
    pad = (hp - h) // 2
    k = 2 * pad + 1

    # ---- hoisted invariants: lane -> batch masks (B-1 compares, once) ----
    lane = jax.lax.broadcasted_iota(jnp.int32, (hp, wpt), 1)
    in_upper = [lane >= bi * w_per for bi in range(1, b_sz)]

    # ---- Linear as N lane-packed broadcast MACs + LeakyReLU (VPU) ----
    # Border rows/lanes of w_ref / b_ref are 0, so the slab border stays 0.
    xp = b_ref[...]                                    # (H+2p, B*(W+2p))
    for n in range(n_sz):
        xsel = xs_ref[n]                               # batch-0 scalar
        for bi in range(1, b_sz):
            xsel = jnp.where(in_upper[bi - 1], xs_ref[bi * n_sz + n], xsel)
        xp = xp + xsel * w_ref[n]
    xp = jnp.maximum(xp, NEG_SLOPE * xp)               # LeakyReLU; 0 stays 0

    # ---- KxK 'same' cross-correlation on the packed, pre-padded slab ----
    # Hoisted row windows: K sublane-shifted (H, B*(W+2p)) views (5 XLU slices
    # instead of 25).
    rows = [xp[ki:ki + h, :] for ki in range(k)]
    # K independent column-accumulator chains (ILP); MACs on 2-vreg slabs.
    col_acc = []
    for kj in range(k):
        a = rows[0] * cw_ref[kj]
        for ki in range(1, k):
            a = a + rows[ki] * cw_ref[ki * k + kj]
        col_acc.append(a)                              # (H, B*(W+2p))
    # Combine with K lane shifts; conv bias folded into the first term.
    out_w = wpt - 2 * pad
    res = col_acc[0][:, :out_w] + cw_ref[k * k]
    for kj in range(1, k):
        res = res + col_acc[kj][:, kj:kj + out_w]      # (H, out_w)

    # ---- un-pack the per-image results out of the packed slab and store ----
    for bi in range(b_sz):
        c0 = bi * w_per
        o_ref[bi] = res[:, c0:c0 + w_sz].astype(o_ref.dtype)


# ----------------------------------------------------------------------------
# One-time parameter prep: PyTorch layouts -> kernel layouts
# ----------------------------------------------------------------------------
def prepare_params(lin_w, lin_b, conv_w, conv_b, *, batch=BATCH):
    """lin_w: (P, N), lin_b: (P,), conv_w: (1,1,K,K), conv_b: (1,)."""
    n = lin_w.shape[1]
    w_img = jnp.asarray(lin_w).T.reshape(n, H, W)                 # (N, H, W)
    b_img = jnp.asarray(lin_b).reshape(H, W)                      # (H, W)
    # bake the zero 'same' border in, then pack batch copies along lanes
    w_bord = jnp.pad(w_img, ((0, 0), (PAD, PAD), (PAD, PAD)))     # (N, 20, 20)
    b_bord = jnp.pad(b_img, ((PAD, PAD), (PAD, PAD)))             # (20, 20)
    w_packed = jnp.tile(w_bord, (1, 1, batch)).astype(jnp.float32)  # (N,20,40)
    b_packed = jnp.tile(b_bord, (1, batch)).astype(jnp.float32)     # (20,40)
    # conv weight + conv bias merged into one flat 1-D SMEM operand
    cw_flat = jnp.concatenate(
        [jnp.asarray(conv_w).reshape(-1),
         jnp.asarray(conv_b).reshape(-1)]).astype(jnp.float32)      # (K*K+1,)
    return w_packed, b_packed, cw_flat


# ----------------------------------------------------------------------------
# Forward: single pallas_call
# ----------------------------------------------------------------------------
@jax.jit
def prior_scalar_to_2d(x, w_packed, b_packed, cw_flat):
    batch = x.shape[0]
    n, hp, wpt = w_packed.shape
    h = hp - 2 * PAD
    w = wpt // batch - 2 * PAD
    out = pl.pallas_call(
        fused_kernel,
        out_shape=jax.ShapeDtypeStruct((batch, h, w), jnp.float32),
        grid_spec=pl.GridSpec(
            grid=(1,),
            in_specs=[
                pl.BlockSpec(memory_space=pltpu.MemorySpace.SMEM),  # x scalars
                pl.BlockSpec(memory_space=pltpu.MemorySpace.SMEM),  # conv w|b
                pl.BlockSpec((n, hp, wpt), lambda i: (0, 0, 0)),    # lin w
                pl.BlockSpec((hp, wpt), lambda i: (0, 0)),          # lin b
            ],
            out_specs=pl.BlockSpec((batch, h, w), lambda i: (0, 0, 0)),
        ),
        compiler_params=pltpu.CompilerParams(
            # Single grid step at B=2; if batch grows, move batch to a leading
            # "parallel" grid axis so v7x's second TensorCore takes half.
            dimension_semantics=("arbitrary",)),
    )(x.reshape(-1), cw_flat, w_packed, b_packed)
    return out[:, None, :, :]   # (B, 1, H, W): free metadata reshape


# ----------------------------------------------------------------------------
# Pure-JAX reference (silent correctness check)
# ----------------------------------------------------------------------------
def reference(x, lin_w, lin_b, conv_w, conv_b):
    y = x @ lin_w.T + lin_b
    y = jnp.where(y >= 0, y, NEG_SLOPE * y)
    y = y.reshape(x.shape[0], 1, H, W)
    y = jax.lax.conv_general_dilated(
        y, conv_w, window_strides=(1, 1), padding="SAME",
        dimension_numbers=("NCHW", "OIHW", "NCHW"))
    return y + conv_b.reshape(1, 1, 1, 1)


if __name__ == "__main__":
    key = jax.random.PRNGKey(0)
    k_x, k_lw, k_lb, k_cw = jax.random.split(key, 4)

    # deterministic synthetic parameters (shapes match the nn.Module __init__)
    x = jax.random.normal(k_x, (BATCH, N_SCALAR), dtype=jnp.float32)
    lin_w = jax.random.normal(k_lw, (P, N_SCALAR), dtype=jnp.float32) * 0.1
    lin_b = jax.random.normal(k_lb, (P,), dtype=jnp.float32) * 0.1
    conv_w = jax.random.normal(k_cw, (1, 1, K, K), dtype=jnp.float32) * 0.1
    conv_b = jnp.full((1,), 2.0, dtype=jnp.float32)   # self._conv.bias.data.fill_(2)

    params = prepare_params(lin_w, lin_b, conv_w, conv_b)   # one-time prep
    out = prior_scalar_to_2d(x, *params)
    out = jax.block_until_ready(out)

    ref = reference(x, lin_w, lin_b, conv_w, conv_b)
    assert out.shape == (BATCH, 1, H, W)
    assert jnp.allclose(out, ref, atol=1e-4, rtol=1e-4)

    print("KERNEL_OK")
</pallas_src>

<mosaic_0001>
module attributes {stable_mosaic.version = 11 : i64} {
  func.func @fused_kernel(%arg0: i32, %arg1: memref<8xf32, #tpu.memory_space<smem>>, %arg2: memref<26xf32, #tpu.memory_space<smem>>, %arg3: memref<4x20x40xf32, #tpu.memory_space<vmem>>, %arg4: memref<20x40xf32, #tpu.memory_space<vmem>>, %arg5: memref<2x16x16xf32, #tpu.memory_space<vmem>>) attributes {dimension_semantics = [#tpu.dimension_semantics<arbitrary>], iteration_bounds = array<i64: 1>, scalar_prefetch = 0 : i64, scratch_operands = 0 : i64, tpu.core_type = #tpu.core_type<tc>, window_params = [{transform_indices = @transform_0, window_bounds = array<i64: 8>}, {transform_indices = @transform_1, window_bounds = array<i64: 26>}, {pipeline_mode = #tpu.pipeline_mode<synchronous>, transform_indices = @transform_2, window_bounds = array<i64: 4, 20, 40>}, {pipeline_mode = #tpu.pipeline_mode<synchronous>, transform_indices = @transform_3, window_bounds = array<i64: 20, 40>}, {pipeline_mode = #tpu.pipeline_mode<synchronous>, transform_indices = @transform_4, window_bounds = array<i64: 2, 16, 16>}]} {
    %0 = tpu.iota {dimensions = array<i32: 1>} : vector<20x40xi32>
    %c20_i32 = arith.constant 20 : i32
    %1 = vector.broadcast %c20_i32 : i32 to vector<20x40xi32>
    %2 = arith.cmpi sge, %0, %1 : vector<20x40xi32>
    %c0 = arith.constant 0 : index
    %c0_0 = arith.constant 0 : index
    %3 = vector.load %arg4[%c0, %c0_0] : memref<20x40xf32, #tpu.memory_space<vmem>>, vector<20x40xf32>
    %c0_1 = arith.constant 0 : index
    %4 = memref.load %arg1[%c0_1] : memref<8xf32, #tpu.memory_space<smem>>
    %c4 = arith.constant 4 : index
    %5 = memref.load %arg1[%c4] : memref<8xf32, #tpu.memory_space<smem>>
    %6 = vector.broadcast %5 : f32 to vector<20x40xf32>
    %7 = vector.broadcast %4 : f32 to vector<20x40xf32>
    %8 = arith.select %2, %6, %7 : vector<20x40xi1>, vector<20x40xf32>
    %c0_2 = arith.constant 0 : index
    %c0_3 = arith.constant 0 : index
    %c0_4 = arith.constant 0 : index
    %9 = vector.load %arg3[%c0_2, %c0_3, %c0_4] : memref<4x20x40xf32, #tpu.memory_space<vmem>>, vector<1x20x40xf32>
    %10 = vector.shape_cast %9 : vector<1x20x40xf32> to vector<20x40xf32>
    %11 = arith.mulf %8, %10 : vector<20x40xf32>
    %12 = arith.addf %3, %11 : vector<20x40xf32>
    %c1 = arith.constant 1 : index
    %13 = memref.load %arg1[%c1] : memref<8xf32, #tpu.memory_space<smem>>
    %c5 = arith.constant 5 : index
    %14 = memref.load %arg1[%c5] : memref<8xf32, #tpu.memory_space<smem>>
    %15 = vector.broadcast %14 : f32 to vector<20x40xf32>
    %16 = vector.broadcast %13 : f32 to vector<20x40xf32>
    %17 = arith.select %2, %15, %16 : vector<20x40xi1>, vector<20x40xf32>
    %c1_5 = arith.constant 1 : index
    %c0_6 = arith.constant 0 : index
    %c0_7 = arith.constant 0 : index
    %18 = vector.load %arg3[%c1_5, %c0_6, %c0_7] : memref<4x20x40xf32, #tpu.memory_space<vmem>>, vector<1x20x40xf32>
    %19 = vector.shape_cast %18 : vector<1x20x40xf32> to vector<20x40xf32>
    %20 = arith.mulf %17, %19 : vector<20x40xf32>
    %21 = arith.addf %12, %20 : vector<20x40xf32>
    %c2 = arith.constant 2 : index
    %22 = memref.load %arg1[%c2] : memref<8xf32, #tpu.memory_space<smem>>
    %c6 = arith.constant 6 : index
    %23 = memref.load %arg1[%c6] : memref<8xf32, #tpu.memory_space<smem>>
    %24 = vector.broadcast %23 : f32 to vector<20x40xf32>
    %25 = vector.broadcast %22 : f32 to vector<20x40xf32>
    %26 = arith.select %2, %24, %25 : vector<20x40xi1>, vector<20x40xf32>
    %c2_8 = arith.constant 2 : index
    %c0_9 = arith.constant 0 : index
    %c0_10 = arith.constant 0 : index
    %27 = vector.load %arg3[%c2_8, %c0_9, %c0_10] : memref<4x20x40xf32, #tpu.memory_space<vmem>>, vector<1x20x40xf32>
    %28 = vector.shape_cast %27 : vector<1x20x40xf32> to vector<20x40xf32>
    %29 = arith.mulf %26, %28 : vector<20x40xf32>
    %30 = arith.addf %21, %29 : vector<20x40xf32>
    %c3 = arith.constant 3 : index
    %31 = memref.load %arg1[%c3] : memref<8xf32, #tpu.memory_space<smem>>
    %c7 = arith.constant 7 : index
    %32 = memref.load %arg1[%c7] : memref<8xf32, #tpu.memory_space<smem>>
    %33 = vector.broadcast %32 : f32 to vector<20x40xf32>
    %34 = vector.broadcast %31 : f32 to vector<20x40xf32>
    %35 = arith.select %2, %33, %34 : vector<20x40xi1>, vector<20x40xf32>
    %c3_11 = arith.constant 3 : index
    %c0_12 = arith.constant 0 : index
    %c0_13 = arith.constant 0 : index
    %36 = vector.load %arg3[%c3_11, %c0_12, %c0_13] : memref<4x20x40xf32, #tpu.memory_space<vmem>>, vector<1x20x40xf32>
    %37 = vector.shape_cast %36 : vector<1x20x40xf32> to vector<20x40xf32>
    %38 = arith.mulf %35, %37 : vector<20x40xf32>
    %39 = arith.addf %30, %38 : vector<20x40xf32>
    %cst = arith.constant 0.00999999977 : f32
    %40 = vector.broadcast %cst : f32 to vector<20x40xf32>
    %41 = arith.mulf %40, %39 : vector<20x40xf32>
    %42 = arith.maximumf %39, %41 : vector<20x40xf32>
    %43 = vector.extract_strided_slice %42 {offsets = [0, 0], sizes = [16, 40], strides = [1, 1]} : vector<20x40xf32> to vector<16x40xf32>
    %44 = vector.extract_strided_slice %42 {offsets = [1, 0], sizes = [16, 40], strides = [1, 1]} : vector<20x40xf32> to vector<16x40xf32>
    %45 = vector.extract_strided_slice %42 {offsets = [2, 0], sizes = [16, 40], strides = [1, 1]} : vector<20x40xf32> to vector<16x40xf32>
    %46 = vector.extract_strided_slice %42 {offsets = [3, 0], sizes = [16, 40], strides = [1, 1]} : vector<20x40xf32> to vector<16x40xf32>
    %47 = vector.extract_strided_slice %42 {offsets = [4, 0], sizes = [16, 40], strides = [1, 1]} : vector<20x40xf32> to vector<16x40xf32>
    %c0_14 = arith.constant 0 : index
    %48 = memref.load %arg2[%c0_14] : memref<26xf32, #tpu.memory_space<smem>>
    %49 = vector.broadcast %48 : f32 to vector<16x40xf32>
    %50 = arith.mulf %43, %49 : vector<16x40xf32>
    %c5_15 = arith.constant 5 : index
    %51 = memref.load %arg2[%c5_15] : memref<26xf32, #tpu.memory_space<smem>>
    %52 = vector.broadcast %51 : f32 to vector<16x40xf32>
    %53 = arith.mulf %44, %52 : vector<16x40xf32>
    %54 = arith.addf %50, %53 : vector<16x40xf32>
    %c10 = arith.constant 10 : index
    %55 = memref.load %arg2[%c10] : memref<26xf32, #tpu.memory_space<smem>>
    %56 = vector.broadcast %55 : f32 to vector<16x40xf32>
    %57 = arith.mulf %45, %56 : vector<16x40xf32>
    %58 = arith.addf %54, %57 : vector<16x40xf32>
    %c15 = arith.constant 15 : index
    %59 = memref.load %arg2[%c15] : memref<26xf32, #tpu.memory_space<smem>>
    %60 = vector.broadcast %59 : f32 to vector<16x40xf32>
    %61 = arith.mulf %46, %60 : vector<16x40xf32>
    %62 = arith.addf %58, %61 : vector<16x40xf32>
    %c20 = arith.constant 20 : index
    %63 = memref.load %arg2[%c20] : memref<26xf32, #tpu.memory_space<smem>>
    %64 = vector.broadcast %63 : f32 to vector<16x40xf32>
    %65 = arith.mulf %47, %64 : vector<16x40xf32>
    %66 = arith.addf %62, %65 : vector<16x40xf32>
    %c1_16 = arith.constant 1 : index
    %67 = memref.load %arg2[%c1_16] : memref<26xf32, #tpu.memory_space<smem>>
    %68 = vector.broadcast %67 : f32 to vector<16x40xf32>
    %69 = arith.mulf %43, %68 : vector<16x40xf32>
    %c6_17 = arith.constant 6 : index
    %70 = memref.load %arg2[%c6_17] : memref<26xf32, #tpu.memory_space<smem>>
    %71 = vector.broadcast %70 : f32 to vector<16x40xf32>
    %72 = arith.mulf %44, %71 : vector<16x40xf32>
    %73 = arith.addf %69, %72 : vector<16x40xf32>
    %c11 = arith.constant 11 : index
    %74 = memref.load %arg2[%c11] : memref<26xf32, #tpu.memory_space<smem>>
    %75 = vector.broadcast %74 : f32 to vector<16x40xf32>
    %76 = arith.mulf %45, %75 : vector<16x40xf32>
    %77 = arith.addf %73, %76 : vector<16x40xf32>
    %c16 = arith.constant 16 : index
    %78 = memref.load %arg2[%c16] : memref<26xf32, #tpu.memory_space<smem>>
    %79 = vector.broadcast %78 : f32 to vector<16x40xf32>
    %80 = arith.mulf %46, %79 : vector<16x40xf32>
    %81 = arith.addf %77, %80 : vector<16x40xf32>
    %c21 = arith.constant 21 : index
    %82 = memref.load %arg2[%c21] : memref<26xf32, #tpu.memory_space<smem>>
    %83 = vector.broadcast %82 : f32 to vector<16x40xf32>
    %84 = arith.mulf %47, %83 : vector<16x40xf32>
    %85 = arith.addf %81, %84 : vector<16x40xf32>
    %c2_18 = arith.constant 2 : index
    %86 = memref.load %arg2[%c2_18] : memref<26xf32, #tpu.memory_space<smem>>
    %87 = vector.broadcast %86 : f32 to vector<16x40xf32>
    %88 = arith.mulf %43, %87 : vector<16x40xf32>
    %c7_19 = arith.constant 7 : index
    %89 = memref.load %arg2[%c7_19] : memref<26xf32, #tpu.memory_space<smem>>
    %90 = vector.broadcast %89 : f32 to vector<16x40xf32>
    %91 = arith.mulf %44, %90 : vector<16x40xf32>
    %92 = arith.addf %88, %91 : vector<16x40xf32>
    %c12 = arith.constant 12 : index
    %93 = memref.load %arg2[%c12] : memref<26xf32, #tpu.memory_space<smem>>
    %94 = vector.broadcast %93 : f32 to vector<16x40xf32>
    %95 = arith.mulf %45, %94 : vector<16x40xf32>
    %96 = arith.addf %92, %95 : vector<16x40xf32>
    %c17 = arith.constant 17 : index
    %97 = memref.load %arg2[%c17] : memref<26xf32, #tpu.memory_space<smem>>
    %98 = vector.broadcast %97 : f32 to vector<16x40xf32>
    %99 = arith.mulf %46, %98 : vector<16x40xf32>
    %100 = arith.addf %96, %99 : vector<16x40xf32>
    %c22 = arith.constant 22 : index
    %101 = memref.load %arg2[%c22] : memref<26xf32, #tpu.memory_space<smem>>
    %102 = vector.broadcast %101 : f32 to vector<16x40xf32>
    %103 = arith.mulf %47, %102 : vector<16x40xf32>
    %104 = arith.addf %100, %103 : vector<16x40xf32>
    %c3_20 = arith.constant 3 : index
    %105 = memref.load %arg2[%c3_20] : memref<26xf32, #tpu.memory_space<smem>>
    %106 = vector.broadcast %105 : f32 to vector<16x40xf32>
    %107 = arith.mulf %43, %106 : vector<16x40xf32>
    %c8 = arith.constant 8 : index
    %108 = memref.load %arg2[%c8] : memref<26xf32, #tpu.memory_space<smem>>
    %109 = vector.broadcast %108 : f32 to vector<16x40xf32>
    %110 = arith.mulf %44, %109 : vector<16x40xf32>
    %111 = arith.addf %107, %110 : vector<16x40xf32>
    %c13 = arith.constant 13 : index
    %112 = memref.load %arg2[%c13] : memref<26xf32, #tpu.memory_space<smem>>
    %113 = vector.broadcast %112 : f32 to vector<16x40xf32>
    %114 = arith.mulf %45, %113 : vector<16x40xf32>
    %115 = arith.addf %111, %114 : vector<16x40xf32>
    %c18 = arith.constant 18 : index
    %116 = memref.load %arg2[%c18] : memref<26xf32, #tpu.memory_space<smem>>
    %117 = vector.broadcast %116 : f32 to vector<16x40xf32>
    %118 = arith.mulf %46, %117 : vector<16x40xf32>
    %119 = arith.addf %115, %118 : vector<16x40xf32>
    %c23 = arith.constant 23 : index
    %120 = memref.load %arg2[%c23] : memref<26xf32, #tpu.memory_space<smem>>
    %121 = vector.broadcast %120 : f32 to vector<16x40xf32>
    %122 = arith.mulf %47, %121 : vector<16x40xf32>
    %123 = arith.addf %119, %122 : vector<16x40xf32>
    %c4_21 = arith.constant 4 : index
    %124 = memref.load %arg2[%c4_21] : memref<26xf32, #tpu.memory_space<smem>>
    %125 = vector.broadcast %124 : f32 to vector<16x40xf32>
    %126 = arith.mulf %43, %125 : vector<16x40xf32>
    %c9 = arith.constant 9 : index
    %127 = memref.load %arg2[%c9] : memref<26xf32, #tpu.memory_space<smem>>
    %128 = vector.broadcast %127 : f32 to vector<16x40xf32>
    %129 = arith.mulf %44, %128 : vector<16x40xf32>
    %130 = arith.addf %126, %129 : vector<16x40xf32>
    %c14 = arith.constant 14 : index
    %131 = memref.load %arg2[%c14] : memref<26xf32, #tpu.memory_space<smem>>
    %132 = vector.broadcast %131 : f32 to vector<16x40xf32>
    %133 = arith.mulf %45, %132 : vector<16x40xf32>
    %134 = arith.addf %130, %133 : vector<16x40xf32>
    %c19 = arith.constant 19 : index
    %135 = memref.load %arg2[%c19] : memref<26xf32, #tpu.memory_space<smem>>
    %136 = vector.broadcast %135 : f32 to vector<16x40xf32>
    %137 = arith.mulf %46, %136 : vector<16x40xf32>
    %138 = arith.addf %134, %137 : vector<16x40xf32>
    %c24 = arith.constant 24 : index
    %139 = memref.load %arg2[%c24] : memref<26xf32, #tpu.memory_space<smem>>
    %140 = vector.broadcast %139 : f32 to vector<16x40xf32>
    %141 = arith.mulf %47, %140 : vector<16x40xf32>
    %142 = arith.addf %138, %141 : vector<16x40xf32>
    %143 = vector.extract_strided_slice %66 {offsets = [0, 0], sizes = [16, 36], strides = [1, 1]} : vector<16x40xf32> to vector<16x36xf32>
    %c25 = arith.constant 25 : index
    %144 = memref.load %arg2[%c25] : memref<26xf32, #tpu.memory_space<smem>>
    %145 = vector.broadcast %144 : f32 to vector<16x36xf32>
    %146 = arith.addf %143, %145 : vector<16x36xf32>
    %147 = vector.extract_strided_slice %85 {offsets = [0, 1], sizes = [16, 36], strides = [1, 1]} : vector<16x40xf32> to vector<16x36xf32>
    %148 = arith.addf %146, %147 : vector<16x36xf32>
    %149 = vector.extract_strided_slice %104 {offsets = [0, 2], sizes = [16, 36], strides = [1, 1]} : vector<16x40xf32> to vector<16x36xf32>
    %150 = arith.addf %148, %149 : vector<16x36xf32>
    %151 = vector.extract_strided_slice %123 {offsets = [0, 3], sizes = [16, 36], strides = [1, 1]} : vector<16x40xf32> to vector<16x36xf32>
    %152 = arith.addf %150, %151 : vector<16x36xf32>
    %153 = vector.extract_strided_slice %142 {offsets = [0, 4], sizes = [16, 36], strides = [1, 1]} : vector<16x40xf32> to vector<16x36xf32>
    %154 = arith.addf %152, %153 : vector<16x36xf32>
    %155 = vector.extract_strided_slice %154 {offsets = [0, 0], sizes = [16, 16], strides = [1, 1]} : vector<16x36xf32> to vector<16x16xf32>
    %c0_22 = arith.constant 0 : index
    %c0_23 = arith.constant 0 : index
    %c0_24 = arith.constant 0 : index
    %156 = vector.load %arg5[%c0_22, %c0_23, %c0_24] : memref<2x16x16xf32, #tpu.memory_space<vmem>>, vector<1x16x16xf32>
    %157 = vector.shape_cast %156 : vector<1x16x16xf32> to vector<16x16xf32>
    %158 = vector.shape_cast %155 : vector<16x16xf32> to vector<1x16x16xf32>
    tpu.vector_store %arg5[%c0_22, %c0_23, %c0_24], %158 {strides = array<i32>} : memref<2x16x16xf32, #tpu.memory_space<vmem>>, vector<1x16x16xf32>,
    %159 = vector.extract_strided_slice %154 {offsets = [0, 20], sizes = [16, 16], strides = [1, 1]} : vector<16x36xf32> to vector<16x16xf32>
    %c1_25 = arith.constant 1 : index
    %c0_26 = arith.constant 0 : index
    %c0_27 = arith.constant 0 : index
    %160 = vector.load %arg5[%c1_25, %c0_26, %c0_27] : memref<2x16x16xf32, #tpu.memory_space<vmem>>, vector<1x16x16xf32>
    %161 = vector.shape_cast %160 : vector<1x16x16xf32> to vector<16x16xf32>
    %162 = vector.shape_cast %159 : vector<16x16xf32> to vector<1x16x16xf32>
    tpu.vector_store %arg5[%c1_25, %c0_26, %c0_27], %162 {strides = array<i32>} : memref<2x16x16xf32, #tpu.memory_space<vmem>>, vector<1x16x16xf32>,
    return
  }
  func.func @transform_0(%arg0: i32) -> i32 {
    %c0_i32 = arith.constant 0 : i32
    %c0_i32_0 = arith.constant 0 : i32
    return %c0_i32 : i32
  }
  func.func @transform_1(%arg0: i32) -> i32 {
    %c0_i32 = arith.constant 0 : i32
    %c0_i32_0 = arith.constant 0 : i32
    return %c0_i32 : i32
  }
  func.func @transform_2(%arg0: i32) -> (i32, i32, i32) {
    %c0_i32 = arith.constant 0 : i32
    %c0_i32_0 = arith.constant 0 : i32
    %c0_i32_1 = arith.constant 0 : i32
    %c0_i32_2 = arith.constant 0 : i32
    return %c0_i32, %c0_i32_0, %c0_i32_1 : i32, i32, i32
  }
  func.func @transform_3(%arg0: i32) -> (i32, i32) {
    %c0_i32 = arith.constant 0 : i32
    %c0_i32_0 = arith.constant 0 : i32
    %c0_i32_1 = arith.constant 0 : i32
    return %c0_i32, %c0_i32_0 : i32, i32
  }
  func.func @transform_4(%arg0: i32) -> (i32, i32, i32) {
    %c0_i32 = arith.constant 0 : i32
    %c0_i32_0 = arith.constant 0 : i32
    %c0_i32_1 = arith.constant 0 : i32
    %c0_i32_2 = arith.constant 0 : i32
    return %c0_i32, %c0_i32_0, %c0_i32_1 : i32, i32, i32
  }
}

</mosaic_0001>

<bundles_post_ra>
// kernel: prior_scalar_to_2d.1
= control target key start
LH: loop header
LB: loop body
LE: loop exit
PB: predicated region body
PF: predicated region fallthrough
CT: control target
= control target key end

     0   :  { %9 = vsyncpa [#allocation4], 0  ;;  %s1114_s0 = inlined_call_operand.vmem [shape: f32[8], index: 0, kind: input, shape index: {}]   ;;  %s1115_s1 = inlined_call_operand.vmem [shape: f32[26], index: 1, kind: input, shape index: {}]   ;;  %s1116_s2 = inlined_call_operand.vmem [shape: f32[4,20,40], index: 2, kind: input, shape index: {}]   ;;  %s1117_s3 = inlined_call_operand.vmem [shape: f32[20,40], index: 3, kind: input, shape index: {}]   ;;  %s1118_s4 = inlined_call_operand.hbm [shape: f32[2,16,16], index: 4, kind: output, shape index: {}]  }
   0x1   :  { %10 = vsyncpa [#allocation6], 0 }
   0x2   :  { %11 = vsyncpa [#allocation3], 0  ;;  %s18_s17 = sshll.u32 %s1114_s0, 4  ;;  %s28_s20 = sshll.u32 %s1115_s1, 4  ;;  %s19_s17 = int_to_ptr.vmem [resolvable:$true] %s18_s17  ;;  %s29_s20 = int_to_ptr.vmem [resolvable:$true] %s28_s20 }
   0x3   :  { %s605_s21 = scalar_lea.vmem %s19_s17, 16  ;;  %p610_p1 = scmp.lt.s32.totalorder %s19_s17, %s19_s17 }
   0x4   :  { %p606_p0 = scmp.ne.s32.totalorder %s19_s17, %s605_s21  ;;  %p611_p2 = scmp.lt.s32.totalorder %s605_s21, %s605_s21 }
   0x6   :  { %p612_p3 = por %p611_p2, %p610_p1 }
   0x8   :  { %p613_p4 = pnand %p612_p3, %p606_p0 }
   0xa   :  { %616 = shalt.err (!%p613_p4)
}
   0xb   :  { %s657_s22 = smov [#allocation2]   ;;  %s617_s23 = scalar_lea.vmem %s29_s20, 16 }
   0xc   :  { %21 = dma.vmem_to_smem %s19_s17, 16, %s657_s22, [#allocation4]  }
   0xd   :  { %p618_p5 = scmp.ne.s32.totalorder %s29_s20, %s617_s23  ;;  %p622_p6 = scmp.lt.s32.totalorder %s29_s20, %s29_s20 }
   0xe   :  { %p623_p7 = scmp.lt.s32.totalorder %s617_s23, %s617_s23 }
  0x10   :  { %p624_p8 = por %p623_p7, %p622_p6 }
  0x12   :  { %p625_p9 = pnand %p624_p8, %p618_p5 }
  0x14   :  { %628 = shalt.err (!%p625_p9)
}
  0x15   :  { %s658_s0 = smov [#allocation5]  }
  0x16   :  { %31 = dma.vmem_to_smem %s29_s20, 16, %s658_s0, [#allocation6]  }
  0x17   :  { %651 = dma.done.wait [#allocation4], 16  }
  0x18   :  { %652 = vsyncadd [#allocation4], 4294967280 }
  0x19   :  { %653 = dma.done.wait [#allocation6], 16  }
  0x1a   :  { %654 = vsyncadd [#allocation6], 4294967280 }
  0x1b   :  { %42 = sfence }
  0x1c   :  { %v43_v0 = vlaneseq  ;;  %s49_s1 = sld [smem:[#allocation2]]  ;;  %s554_s24 = sld [smem:[#allocation2 + $0x4]]  ;;  %v54_v2 = vld [vmem:[%s1116_s2] sm:$0xff]  ;;  %v55_v3 = vld [vmem:[%s1116_s2 + $0x8] sm:$0xff]  ;;  %v557_v6 = vld [vmem:[%s1116_s2 + $0x18] sm:$0xff]  ;;  %vm126_vm1 = vcmask 1046528  }
  0x1d   :  { %s555_s25 = sld [smem:[#allocation2 + $0x1]]  ;;  %s556_s26 = sld [smem:[#allocation2 + $0x5]]  ;;  %v558_v7 = vld [vmem:[%s1116_s2 + $0x20] sm:$0xff]  ;;  %v47_v9 = vld [vmem:[%s1117_s3 + $0x8] sm:$0xff]  ;;  %v562_v17 = vld [vmem:[%s1116_s2 + $0x30] sm:$0xff]  ;;  %vm144_vm2 = vcmask 1045504  }
  0x1e   :  { %v44_v1 = vand.u32 127, %v43_v0  ;;  %s698_s27 = sld [smem:[#allocation2 + $0x2]]  ;;  %s700_s28 = sld [smem:[#allocation2 + $0x6]]  ;;  %v46_v8 = vld [vmem:[%s1117_s3] sm:$0xff]  ;;  %v563_v18 = vld [vmem:[%s1116_s2 + $0x38] sm:$0xff]  ;;  %v567_v23 = vld [vmem:[%s1116_s2 + $0x48] sm:$0xff] }
  0x1f   :  { %s702_s29 = sld [smem:[#allocation2 + $0x3]]  ;;  %s704_s30 = sld [smem:[#allocation2 + $0x7]]  ;;  %v568_v24 = vld [vmem:[%s1116_s2 + $0x50] sm:$0xff]  ;;  %v559_v37 = vld [vmem:[%s1116_s2 + $0x28] sm:$0xf]  ;;  %vm162_vm3 = vcmask 1044480  }
  0x20   :  { %vm45_vm0 = vcmp.ge.s32.totalorder %v44_v1, 20  ;;  %s712_s9 = sld [smem:[#allocation5 + $0x2]]  ;;  %s714_s10 = sld [smem:[#allocation5 + $0x7]]  ;;  %v56_v32 = vld [vmem:[%s1116_s2 + $0x10] sm:$0xf]  ;;  %vm180_vm4 = vcmask 1043456  }
  0x21   :  { %s722_s15 = sld [smem:[#allocation5 + $0xc]]  ;;  %s724_s16 = sld [smem:[#allocation5 + $0x11]]  ;;  %v48_v40 = vld [vmem:[%s1117_s3 + $0x10] sm:$0xf]  ;;  %v564_v45 = vld [vmem:[%s1116_s2 + $0x40] sm:$0xf] }
  0x22   :  { %v51_v4 = vstv %s554_s24  ;;  %v52_v5 = vstv %s49_s1  ;;  %s733_s21 = sld [smem:[#allocation5 + $0x16]]  ;;  %s743_s24 = sld [smem:[#allocation5 + $0x1]]  ;;  %v569_v50 = vld [vmem:[%s1116_s2 + $0x58] sm:$0xf]  ;;  %vm522_vm5 = vcmask 130048  }
  0x23   :  { %v53_v10 = vsel %vm45_vm0, %v51_v4, %v52_v5  ;;  %v65_v11 = vstv %s556_s26  ;;  %v66_v12 = vstv %s555_s25  ;;  %s745_s26 = sld [smem:[#allocation5 + $0x6]]  ;;  %s755_s7 = sld [smem:[#allocation5 + $0xb]] }
  0x24   :  { %v57_v13 = vmul.f32 %v54_v2, %v53_v10  ;;  %v58_v14 = vmul.f32 %v55_v3, %v53_v10  ;;  %v67_v15 = vsel %vm45_vm0, %v65_v11, %v66_v12  ;;  %v81_v16 = vstv %s698_s27  ;;  %s757_s8 = sld [smem:[#allocation5 + $0x10]]  ;;  %s767_s12 = sld [smem:[#allocation5 + $0x3]] }
  0x25   :  { %v72_v19 = vmul.f32 %v557_v6, %v67_v15  ;;  %v73_v20 = vmul.f32 %v558_v7, %v67_v15  ;;  %v80_v21 = vstv %s700_s28  ;;  %v96_v22 = vstv %s702_s29  ;;  %s761_s28 = sld [smem:[#allocation5 + $0x15]]  ;;  %s769_s13 = sld [smem:[#allocation5 + $0x8]] }
  0x26   :  { %v60_v25 = vadd.f32 %v57_v13, %v46_v8  ;;  %v61_v26 = vadd.f32 %v58_v14, %v47_v9  ;;  %v82_v27 = vsel %vm45_vm0, %v80_v21, %v81_v16  ;;  %v95_v28 = vstv %s704_s30  ;;  %s774_s17 = sld [smem:[#allocation5 + $0xd]]  ;;  %s776_s18 = sld [smem:[#allocation5 + $0x12]] }
  0x27   :  { %v87_v29 = vmul.f32 %v562_v17, %v82_v27  ;;  %v88_v30 = vmul.f32 %v563_v18, %v82_v27  ;;  %v97_v31 = vsel %vm45_vm0, %v95_v28, %v96_v22  ;;  %v263_v38 = vstv %s712_s9  ;;  %s785_s22 = sld [smem:[#allocation5 + $0x17]]  ;;  %s796_s9 = sld [smem:[#allocation5 + $0x4]] }
  0x28   :  { %v75_v33 = vadd.f32 %v72_v19, %v60_v25  ;;  %v76_v34 = vadd.f32 %v73_v20, %v61_v26  ;;  %v102_v35 = vmul.f32 %v567_v23, %v97_v31  ;;  %v103_v36 = vmul.f32 %v568_v24, %v97_v31  ;;  %s592_s1 = sld [smem:[#allocation5 + $0x13]]  ;;  %s659_s2 = smov 126  }
  0x29   :  { %v780_v39 = vstv %s714_s10  ;;  %v788_v43 = vstv %s722_s15  ;;  %v791_v44 = vstv %s724_s16  ;;  %s798_s10 = sld [smem:[#allocation5 + $0x9]]  ;;  %v801_v46 = vstv %s733_s21  ;;  %s591_s16 = sld [smem:[#allocation5 + $0xe]] }
  0x2a   :  { %v90_v41 = vadd.f32 %v87_v29, %v75_v33  ;;  %v91_v42 = vadd.f32 %v88_v30, %v76_v34  ;;  %v191_v47 = vstv %s743_s24  ;;  %v59_v48 = vmul.f32 %v56_v32, %v53_v10  ;;  %s660_s21 = smov 127   ;;  %s1007_s24 = sld [smem:[#allocation5 + $0x18]] }
  0x2b   :  { %v74_v49 = vmul.f32 %v559_v37, %v67_v15  ;;  %v808_v53 = vstv %s745_s26  ;;  %v811_v54 = vstv %s755_s7  ;;  %v814_v55 = vstv %s757_s8  ;;  %s1033_s26 = sld [smem:[#allocation5 + $0x5]]  ;;  %s1043_s25 = sld [smem:[#allocation5]] }
  0x2c   :  { %v105_v51 = vadd.f32 %v102_v35, %v90_v41  ;;  %v106_v52 = vadd.f32 %v103_v36, %v91_v42  ;;  %v817_v56 = vstv %s761_s28  ;;  %v62_v57 = vadd.f32 %v59_v48, %v48_v40  ;;  %s1045_s5 = sld [smem:[#allocation5 + $0xa]]  ;;  %s661_s27 = smov 125  }
  0x2d   :  { %v89_v58 = vmul.f32 %v564_v45, %v82_v27  ;;  %v104_v61 = vmul.f32 %v569_v50, %v97_v31  ;;  %v335_v62 = vstv %s767_s12  ;;  %v821_v0 = vstv %s769_s13  ;;  %s1051_s6 = sld [smem:[#allocation5 + $0xf]]  ;;  %s1053_s7 = sld [smem:[#allocation5 + $0x14]] }
  0x2e   :  { %v108_v59 = vmul.f32 0.01, %v105_v51  ;;  %v109_v60 = vmul.f32 0.01, %v106_v52  ;;  %v77_v63 = vadd.f32 %v74_v49, %v62_v57  ;;  %v824_v1 = vstv %s774_s17  ;;  %s662_s8 = smov 124   ;;  %s594_s28 = sld [smem:[#allocation5 + $0x19]] }
  0x2f   :  { %v827_v2 = vstv %s776_s18  ;;  %v834_v5 = vstv %s785_s22  ;;  %v407_v6 = vstv %s796_s9  ;;  %v838_v8 = vstv %s798_s10  ;;  %s663_s29 = smov 108   ;;  %s664_s11 = smov [#allocation7]  }
  0x30   :  { %v829_v3 = vmax.f32 %v105_v51, %v108_v59  ;;  %v831_v4 = vmax.f32 %v106_v52, %v109_v60  ;;  %v92_v7 = vadd.f32 %v89_v58, %v77_v63  ;;  %v840_v9 = vstv %s591_s16  ;;  %s541_s12 = sshll.u32 %s664_s11, 4  ;;  %s542_s12 = int_to_ptr.vmem [resolvable:$true] %s541_s12 }
  0x31   :  { %v842_v10 = vstv %s592_s1  ;;  %s629_s13 = scalar_lea.vmem %s542_s12, 512  ;;  %p634_p11 = scmp.lt.s32.totalorder %s542_s12, %s542_s12 }
  0x32   :  { %v264_v11 = vmul.f32 %v263_v38, %v829_v3  ;;  %v846_v12 = vmul.f32 %v263_v38, %v831_v4  ;;  %v268_v13 = vmul.f32 %v780_v39, %v829_v3  ;;  %v852_v14 = vmul.f32 %v780_v39, %v831_v4  ;;  %p630_p10 = scmp.ne.s32.totalorder %s542_s12, %s629_s13  ;;  %p635_p12 = scmp.lt.s32.totalorder %s629_s13, %s629_s13 }
  0x33   :  { %v285_v15 = vmul.f32 %v788_v43, %v829_v3  ;;  %v858_v16 = vmul.f32 %v788_v43, %v831_v4  ;;  %v302_v17 = vmul.f32 %v791_v44, %v829_v3  ;;  %v864_v18 = vmul.f32 %v791_v44, %v831_v4 }
  0x34   :  { %v274_v19 = vrot.slane %v268_v13, 1  ;;  %v275_v20 = vrot.slane %v852_v14, 1  ;;  %v319_v21 = vmul.f32 %v801_v46, %v829_v3  ;;  %v871_v22 = vmul.f32 %v801_v46, %v831_v4  ;;  %p636_p13 = por %p635_p12, %p634_p11 }
  0x35   :  { %v291_v23 = vrot.slane %v285_v15, 2  ;;  %v292_v24 = vrot.slane %v858_v16, 2  ;;  %v308_v25 = vrot.slane %v302_v17, 3  ;;  %v309_v26 = vrot.slane %v864_v18, 3 }
  0x36   :  { %v276_v27 = vsel %vm126_vm1, %v274_v19, %v275_v20  ;;  %v325_v28 = vrot.slane %v319_v21, 4  ;;  %v326_v29 = vrot.slane %v871_v22, 4  ;;  %v192_v30 = vmul.f32 %v191_v47, %v829_v3  ;;  %p637_p0 = pnand %p636_p13, %p630_p10 }
  0x37   :  { %v281_v31 = vadd.f32 %v276_v27, %v264_v11  ;;  %v293_v32 = vsel %vm144_vm2, %v291_v23, %v292_v24  ;;  %v310_v33 = vsel %vm162_vm3, %v308_v25, %v309_v26  ;;  %v887_v34 = vmul.f32 %v191_v47, %v831_v4 }
  0x38   :  { %v327_v35 = vsel %vm180_vm4, %v325_v28, %v326_v29  ;;  %v196_v36 = vmul.f32 %v808_v53, %v829_v3  ;;  %v896_v37 = vmul.f32 %v808_v53, %v831_v4  ;;  %v213_v38 = vmul.f32 %v811_v54, %v829_v3 }
  0x39   :  { %v298_v40 = vadd.f32 %v293_v32, %v281_v31  ;;  %v902_v41 = vmul.f32 %v811_v54, %v831_v4  ;;  %v230_v42 = vmul.f32 %v814_v55, %v829_v3  ;;  %v231_v45 = vmul.f32 %v814_v55, %v831_v4 }
  0x3a   :  { %v202_v47 = vrot.slane %v196_v36, 1  ;;  %v203_v48 = vrot.slane %v896_v37, 1  ;;  %v219_v49 = vrot.slane %v213_v38, 2  ;;  %v247_v50 = vmul.f32 %v817_v56, %v829_v3 }
  0x3b   :  { %v315_v51 = vadd.f32 %v310_v33, %v298_v40  ;;  %v220_v52 = vrot.slane %v902_v41, 2  ;;  %v236_v57 = vrot.slane %v230_v42, 3  ;;  %v237_v58 = vrot.slane %v231_v45, 3 }
  0x3c   :  { %v204_v59 = vsel %vm126_vm1, %v202_v47, %v203_v48  ;;  %v248_v60 = vmul.f32 %v817_v56, %v831_v4  ;;  %v253_v63 = vrot.slane %v247_v50, 4  ;;  %v107_v11 = vadd.f32 %v104_v61, %v92_v7 }
  0x3d   :  { %v332_v13 = vadd.f32 %v327_v35, %v315_v51  ;;  %v209_v15 = vadd.f32 %v204_v59, %v192_v30  ;;  %v221_v17 = vsel %vm144_vm2, %v219_v49, %v220_v52  ;;  %v238_v19 = vsel %vm162_vm3, %v236_v57, %v237_v58 }
  0x3e   :  { %v254_v21 = vrot.slane %v248_v60, 4  ;;  %v110_v23 = vmul.f32 0.01, %v107_v11  ;;  %v920_v25 = vmul.f32 %v335_v62, %v831_v4  ;;  %v924_v27 = vmul.f32 %v821_v0, %v831_v4 }
  0x3f   :  { %494 = vrot.lane.b32.xlu1 %v332_v13, %s659_s2  ;;  %v226_v61 = vadd.f32 %v221_v17, %v209_v15  ;;  %v929_v7 = vmul.f32 %v824_v1, %v831_v4  ;;  %v933_v28 = vmul.f32 %v827_v2, %v831_v4  ;;  %v937_v30 = vmul.f32 %v834_v5, %v831_v4 }
  0x40   :  { %v255_v31 = vsel %vm180_vm4, %v253_v63, %v254_v21  ;;  %v940_v32 = vmax.f32 %v107_v11, %v110_v23  ;;  %v347_v33 = vrot.slane %v924_v27, 1  ;;  %v336_v35 = vmul.f32 %v335_v62, %v829_v3 }
  0x41   :  { %v243_v36 = vadd.f32 %v238_v19, %v226_v61  ;;  %v364_v37 = vrot.slane %v929_v7, 2  ;;  %v381_v38 = vrot.slane %v933_v28, 3  ;;  %v398_v40 = vrot.slane %v937_v30, 4 }
  0x42   :  { %v270_v41 = vmul.f32 %v780_v39, %v940_v32  ;;  %v287_v42 = vmul.f32 %v788_v43, %v940_v32  ;;  %v304_v45 = vmul.f32 %v791_v44, %v940_v32  ;;  %v321_v47 = vmul.f32 %v801_v46, %v940_v32 }
  0x43   :  { %v260_v62 = vadd.f32 %v255_v31, %v243_v36  ;;  %v198_v49 = vmul.f32 %v808_v53, %v940_v32  ;;  %v215_v50 = vmul.f32 %v811_v54, %v940_v32  ;;  %v232_v51 = vmul.f32 %v814_v55, %v940_v32 }
  0x44   :  { %v277_v39 = vrot.slane %v270_v41, 1  ;;  %v294_v57 = vrot.slane %v287_v42, 2  ;;  %v311_v59 = vrot.slane %v304_v45, 3  ;;  %v328_v43 = vrot.slane %v321_v47, 4 }
  0x45   :  { %484 = vrot.lane.b32.xlu0 %v260_v62, %s660_s21  ;;  %v205_v44 = vrot.slane %v198_v49, 1  ;;  %v222_v60 = vrot.slane %v215_v50, 2  ;;  %v239_v46 = vrot.slane %v232_v51, 3  ;;  %v249_v63 = vmul.f32 %v817_v56, %v940_v32 }
  0x46   :  { %v278_v53 = vsel %vm126_vm1, %v275_v20, %v277_v39  ;;  %v295_v54 = vsel %vm144_vm2, %v292_v24, %v294_v57  ;;  %v312_v55 = vsel %vm162_vm3, %v309_v26, %v311_v59  ;;  %v329_v11 = vsel %vm180_vm4, %v326_v29, %v328_v43 }
  0x47   :  { %v282_v13 = vadd.f32 %v278_v53, %v846_v12  ;;  %v206_v56 = vsel %vm126_vm1, %v203_v48, %v205_v44  ;;  %v223_v14 = vsel %vm144_vm2, %v220_v52, %v222_v60  ;;  %v240_v20 = vsel %vm162_vm3, %v237_v58, %v239_v46 }
  0x48   :  { %v210_v16 = vadd.f32 %v206_v56, %v887_v34  ;;  %v256_v15 = vrot.slane %v249_v63, 4  ;;  %v342_v18 = vmul.f32 %v821_v0, %v940_v32  ;;  %v359_v24 = vmul.f32 %v824_v1, %v940_v32 }
  0x49   :  { %v299_v22 = vadd.f32 %v295_v54, %v282_v13  ;;  %v376_v26 = vmul.f32 %v827_v2, %v940_v32  ;;  %v393_v12 = vmul.f32 %v834_v5, %v940_v32  ;;  %v340_v29 = vmul.f32 %v821_v0, %v829_v3 }
  0x4a   :  { %v227_v48 = vadd.f32 %v223_v14, %v210_v16  ;;  %v257_v34 = vsel %vm180_vm4, %v254_v21, %v256_v15  ;;  %v349_v52 = vrot.slane %v342_v18, 1  ;;  %v366_v58 = vrot.slane %v359_v24, 2 }
  0x4b   :  { %v316_v17 = vadd.f32 %v312_v55, %v299_v22  ;;  %v383_v19 = vrot.slane %v376_v26, 3  ;;  %v400_v23 = vrot.slane %v393_v12, 4  ;;  %v346_v27 = vrot.slane %v340_v29, 1 }
  0x4c   :  { %v244_v61 = vadd.f32 %v240_v20, %v227_v48  ;;  %v350_v31 = vsel %vm126_vm1, %v347_v33, %v349_v52  ;;  %v367_v36 = vsel %vm144_vm2, %v364_v37, %v366_v58  ;;  %v357_v0 = vmul.f32 %v824_v1, %v829_v3 }
  0x4d   :  { %v333_v41 = vadd.f32 %v329_v11, %v316_v17  ;;  %v354_v21 = vadd.f32 %v350_v31, %v920_v25  ;;  %v384_v42 = vsel %vm162_vm3, %v381_v38, %v383_v19  ;;  %v401_v45 = vsel %vm180_vm4, %v398_v40, %v400_v23 }
  0x4e   :  { %v261_v47 = vadd.f32 %v257_v34, %v244_v61  ;;  %v348_v62 = vsel %vm126_vm1, %v346_v27, %v347_v33  ;;  %v363_v49 = vrot.slane %v357_v0, 2  ;;  %v374_v1 = vmul.f32 %v827_v2, %v829_v3 }
  0x4f   :  { %496 = vrot.lane.b32.xlu1 %v333_v41, %s659_s2  ;;  %v371_v25 = vadd.f32 %v367_v36, %v354_v21  ;;  %v353_v50 = vadd.f32 %v348_v62, %v336_v35  ;;  %v391_v51 = vmul.f32 %v834_v5, %v829_v3  ;;  %v409_v39 = vmul.f32 %v407_v6, %v831_v4 }
  0x50   :  { %486 = vrot.lane.b32.xlu0 %v261_v47, %s660_s21  ;;  %v365_v33 = vsel %vm144_vm2, %v363_v49, %v364_v37  ;;  %v380_v57 = vrot.slane %v374_v1, 3  ;;  %v413_v2 = vmul.f32 %v838_v8, %v831_v4  ;;  %v414_v59 = vmul.f32 %v838_v8, %v940_v32 }
  0x51   :  { %v388_v35 = vadd.f32 %v384_v42, %v371_v25  ;;  %v370_v43 = vadd.f32 %v365_v33, %v353_v50  ;;  %v397_v44 = vrot.slane %v391_v51, 4  ;;  %v430_v5 = vmul.f32 %v840_v9, %v831_v4 }
  0x52   :  { %v382_v60 = vsel %vm162_vm3, %v380_v57, %v381_v38  ;;  %v419_v7 = vrot.slane %v413_v2, 1  ;;  %v421_v46 = vrot.slane %v414_v59, 1  ;;  %v431_v37 = vmul.f32 %v840_v9, %v940_v32 }
  0x53   :  { %v405_v63 = vadd.f32 %v401_v45, %v388_v35  ;;  %v387_v53 = vadd.f32 %v382_v60, %v370_v43  ;;  %v399_v54 = vsel %vm180_vm4, %v397_v44, %v398_v40  ;;  %v436_v55 = vrot.slane %v430_v5, 2 }
  0x54   :  { %v422_v28 = vsel %vm126_vm1, %v419_v7, %v421_v46  ;;  %v438_v11 = vrot.slane %v431_v37, 2  ;;  %v447_v38 = vmul.f32 %v842_v10, %v831_v4  ;;  %v448_v13 = vmul.f32 %v842_v10, %v940_v32 }
  0x55   :  { %506 = vrot.lane.b32.xlu1 %v405_v63, %s661_s27  ;;  %v404_v56 = vadd.f32 %v399_v54, %v387_v53  ;;  %v426_v30 = vadd.f32 %v422_v28, %v409_v39  ;;  %v462_v14 = vstv %s1007_s24  ;;  %v408_v40 = vmul.f32 %v407_v6, %v829_v3 }
  0x56   :  { %v439_v20 = vsel %vm144_vm2, %v436_v55, %v438_v11  ;;  %v453_v16 = vrot.slane %v447_v38, 3  ;;  %v455_v15 = vrot.slane %v448_v13, 3  ;;  %v464_v18 = vmul.f32 %v462_v14, %v831_v4 }
  0x57   :  { %504 = vrot.lane.b32.xlu0 %v404_v56, %s661_s27  ;;  %v443_v24 = vadd.f32 %v439_v20, %v426_v30  ;;  %v465_v22 = vmul.f32 %v462_v14, %v940_v32  ;;  %v412_v26 = vmul.f32 %v838_v8, %v829_v3  ;;  %v429_v6 = vmul.f32 %v840_v9, %v829_v3 }
  0x58   :  { %v456_v12 = vsel %vm162_vm3, %v453_v16, %v455_v15  ;;  %v470_v29 = vrot.slane %v464_v18, 4  ;;  %v446_v48 = vmul.f32 %v842_v10, %v829_v3  ;;  %v463_v34 = vmul.f32 %v462_v14, %v829_v3 }
  0x59   :  { %v460_v52 = vadd.f32 %v456_v12, %v443_v24  ;;  %v472_v58 = vrot.slane %v465_v22, 4  ;;  %v418_v17 = vrot.slane %v412_v26, 1  ;;  %v435_v19 = vrot.slane %v429_v6, 2 }
  0x5a   :  { %v452_v8 = vrot.slane %v446_v48, 3  ;;  %v469_v23 = vrot.slane %v463_v34, 4  ;;  %v119_v27 = vstv %s1033_s26  ;;  %v115_v21 = vstv %s1043_s25 }
  0x5b   :  { %v473_v9 = vsel %vm180_vm4, %v470_v29, %v472_v58  ;;  %v420_v61 = vsel %vm126_vm1, %v418_v17, %v419_v7  ;;  %v437_v31 = vsel %vm144_vm2, %v435_v19, %v436_v55  ;;  %v121_v10 = vmul.f32 %v119_v27, %v831_v4 }
  0x5c   :  { %v477_v36 = vadd.f32 %v473_v9, %v460_v52  ;;  %v425_v0 = vadd.f32 %v420_v61, %v408_v40  ;;  %v454_v41 = vsel %vm162_vm3, %v452_v8, %v453_v16  ;;  %v471_v42 = vsel %vm180_vm4, %v469_v23, %v470_v29 }
  0x5d   :  { %v137_v45 = vstv %s1045_s5  ;;  %v155_v47 = vstv %s1051_s6  ;;  %v173_v62 = vstv %s1053_s7  ;;  %v128_v51 = vrot.slane %v121_v10, 1 }
  0x5e   :  { %516 = vrot.lane.b32.xlu1 %v477_v36, %s662_s8  ;;  %v442_v49 = vadd.f32 %v437_v31, %v425_v0  ;;  %v139_v1 = vmul.f32 %v137_v45, %v831_v4  ;;  %v157_v25 = vmul.f32 %v155_v47, %v831_v4  ;;  %v175_v50 = vmul.f32 %v173_v62, %v831_v4 }
  0x5f   :  { %v116_v39 = vmul.f32 %v115_v21, %v829_v3  ;;  %v120_v33 = vmul.f32 %v119_v27, %v829_v3  ;;  %v138_v57 = vmul.f32 %v137_v45, %v829_v3  ;;  %v156_v60 = vmul.f32 %v155_v47, %v829_v3 }
  0x60   :  { %v459_v2 = vadd.f32 %v454_v41, %v442_v49  ;;  %v146_v59 = vrot.slane %v139_v1, 2  ;;  %v164_v35 = vrot.slane %v157_v25, 3  ;;  %v182_v43 = vrot.slane %v175_v50, 4 }
  0x61   :  { %v127_v44 = vrot.slane %v120_v33, 1  ;;  %v145_v5 = vrot.slane %v138_v57, 2  ;;  %v174_v7 = vmul.f32 %v173_v62, %v829_v3  ;;  %v117_v37 = vmul.f32 %v115_v21, %v831_v4 }
  0x62   :  { %v476_v46 = vadd.f32 %v471_v42, %v459_v2  ;;  %v122_v63 = vmul.f32 %v119_v27, %v940_v32  ;;  %v140_v53 = vmul.f32 %v137_v45, %v940_v32  ;;  %v163_v28 = vrot.slane %v156_v60, 3 }
  0x63   :  { %v129_v54 = vsel %vm126_vm1, %v127_v44, %v128_v51  ;;  %v147_v55 = vsel %vm144_vm2, %v145_v5, %v146_v59  ;;  %v181_v11 = vrot.slane %v174_v7, 4  ;;  %v158_v30 = vmul.f32 %v155_v47, %v940_v32 }
  0x64   :  { %514 = vrot.lane.b32.xlu0 %v476_v46, %s662_s8  ;;  %v134_v38 = vadd.f32 %v129_v54, %v116_v39  ;;  %v130_v13 = vrot.slane %v122_v63, 1  ;;  %v148_v56 = vrot.slane %v140_v53, 2  ;;  %v165_v3 = vsel %vm162_vm3, %v163_v28, %v164_v35 }
  0x65   :  { %v183_v4 = vsel %vm180_vm4, %v181_v11, %v182_v43  ;;  %v176_v14 = vmul.f32 %v173_v62, %v940_v32  ;;  %v166_v15 = vrot.slane %v158_v30, 3  ;;  %v479_v58 = vstv %s594_s28 }
  0x66   :  { %v152_v40 = vadd.f32 %v147_v55, %v134_v38  ;;  %v131_v20 = vsel %vm126_vm1, %v128_v51, %v130_v13  ;;  %v149_v16 = vsel %vm144_vm2, %v146_v59, %v148_v56 }
  0x67   :  { %v135_v18 = vadd.f32 %v131_v20, %v117_v37  ;;  %v184_v24 = vrot.slane %v176_v14, 4  ;;  %v167_v26 = vsel %vm162_vm3, %v164_v35, %v166_v15 }
  0x68   :  { %v170_v22 = vadd.f32 %v165_v3, %v152_v40 }
  0x69   :  { %v153_v6 = vadd.f32 %v149_v16, %v135_v18  ;;  %v185_v12 = vsel %vm180_vm4, %v182_v43, %v184_v24 }
  0x6a   :  { %v188_v29 = vadd.f32 %v183_v4, %v170_v22 }
  0x6b   :  { %v171_v48 = vadd.f32 %v167_v26, %v153_v6 }
  0x6c   :  { %v480_v9 = vadd.f32 %v479_v58, %v188_v29 }
  0x6d   :  { %v189_v34 = vadd.f32 %v185_v12, %v171_v48 }
  0x6f   :  { %v481_v17 = vadd.f32 %v479_v58, %v189_v34 }
  0xb1   :  { %v495_v52 = vpop.permute.xlu1 %494 }
  0xb7   :  { %v485_v32 = vpop.permute.xlu0 %484 }
  0xb8   :  { %v490_v31 = vadd.f32 %v485_v32, %v480_v9 }
  0xba   :  { %v500_v21 = vadd.f32 %v495_v52, %v490_v31 }
  0xc1   :  { %v497_v19 = vpop.permute.xlu1 %496 }
  0xc2   :  { %v487_v8 = vpop.permute.xlu0 %486 }
  0xc3   :  { %v491_v23 = vadd.f32 %v487_v8, %v481_v17 }
  0xc5   :  { %v501_v61 = vadd.f32 %v497_v19, %v491_v23 }
  0xc7   :  { %v507_v27 = vpop.permute.xlu1 %506 }
  0xc8   :  { %v511_v10 = vadd.f32 %v507_v27, %v501_v61 }
  0xc9   :  { %v505_v36 = vpop.permute.xlu0 %504 }
  0xca   :  { %v510_v42 = vadd.f32 %v505_v36, %v500_v21 }
  0xd0   :  { %v517_v0 = vpop.permute.xlu1 %516 }
  0xd1   :  { %v521_v41 = vadd.f32 %v517_v0, %v511_v10 }
  0xd3   :  { %524 = vst.msk [vmem:[#allocation7 + $0x8] sm:$0xff] %vm522_vm5, %v521_v41  ;;  %529 = vrot.lane.b32.xlu1 %v521_v41, %s663_s29 }
  0xd6   :  { %v515_v45 = vpop.permute.xlu0 %514 }
  0xd7   :  { %v520_v47 = vadd.f32 %v515_v45, %v510_v42 }
  0xd9   :  { %523 = vst.msk [vmem:[#allocation7] sm:$0xff] %vm522_vm5, %v520_v47  ;;  %527 = vrot.lane.b32.xlu0 %v520_v47, %s663_s29 }
 0x145   :  { %v530_v62 = vpop.permute.xlu1 %529 }
 0x146   :  { %535 = vst.msk [vmem:[#allocation7 + $0x18] sm:$0xff] %vm522_vm5, %v530_v62 }
 0x14b   :  { %v528_v49 = vpop.permute.xlu0 %527 }
 0x14c   :  { %534 = vst.msk [vmem:[#allocation7 + $0x10] sm:$0xff] %vm522_vm5, %v528_v49 }
 0x14d   :  { %640 = shalt.err (!%p637_p0)
}
 0x14e   :  { %s641_s17 = scalar_lea.hbm %s1118_s4, 512 }
 0x14f   :  { %p642_p1 = scmp.ne.s32.totalorder %s1118_s4, %s641_s17  ;;  %p645_p2 = scmp.lt.u32.totalorder %s641_s17, %s1118_s4 }
 0x151   :  { %p647_p3 = pnand %p645_p2, %p642_p1 }
 0x153   :  { %650 = shalt.err (!%p647_p3)
}
 0x154   :  { %s665_s23 = smov 128   ;;  %s666_s0 = smov 8  }
 0x155   :  { %547 = dma.vmem_to_hbm [thread:$0]  %s542_s12, 512, %s1118_s4, [#allocation3], %s665_s23, %s665_s23, %s666_s0  }
 0x156   :  { %655 = dma.done.wait [#allocation3], 512  }
 0x157   :  { %656 = vsyncadd [#allocation3], 4294966784 }
 0x158   :  { %551 = vsyncpa [#allocation3], 1 }
 0x159   :  { %552 = vsyncpa [#allocation4], 1 }
 0x15a   :  { %553 = vsyncpa [#allocation6], 1 }

</bundles_post_ra>
